<compile_context>
chip_gen: v7x
topology: tpu7x:2x2x1
jax: 0.10.0
libtpu: 0.0.40
codegen_flags: <defaults>
</compile_context>

<pallas_src>
import numpy as np
import jax
import jax.numpy as jnp
from jax.experimental import pallas as pl
from jax.experimental.pallas import tpu as pltpu


# -----------------------------------------------------------------------------
# In-kernel math
# -----------------------------------------------------------------------------
def _log_prob_body(log_alphas, log_u, lam, const_term, dim):
    """Concrete log-prob on a (tb, D) tile.

    Rearranged vs. the naive form:
        z       = log_alphas - lam * log_u
        log_den = logsumexp(z, axis=1)                      (tb, 1)
        log_num = z - log_u       (== log_alphas - (lam+1) * log_u)
        lp      = const + sum(log_num, axis=1) - dim * log_den
    avoiding the (tb,1)->(tb,D) broadcast subtraction and one multiply/elem.
    """
    z = log_alphas - lam * log_u
    m = jnp.max(z, axis=1, keepdims=True)
    log_den = m + jnp.log(jnp.sum(jnp.exp(z - m), axis=1, keepdims=True))
    log_num_sum = jnp.sum(z - log_u, axis=1, keepdims=True)
    return const_term + log_num_sum - float(dim) * log_den


def make_log_prob_kernel(lam, const_term, dim):
    def kernel(u_ref, cond_ref, w_ref, b_ref, out_ref):
        # log_alpha_map (Linear) on the MXU, then Concrete log-prob on the VPU.
        log_alphas = (
            jnp.dot(cond_ref[...], w_ref[...], preferred_element_type=jnp.float32)
            + b_ref[...]
        )
        log_u = jnp.log(u_ref[...])
        out_ref[...] = _log_prob_body(log_alphas, log_u, lam, const_term, dim)

    return kernel


def make_sample_kernel(lam, const_term, dim):
    inv_lam = 1.0 / lam

    def kernel(cond_ref, gumbel_ref, w_ref, b_ref, sample_ref, lp_ref):
        log_alphas = (
            jnp.dot(cond_ref[...], w_ref[...], preferred_element_type=jnp.float32)
            + b_ref[...]
        )
        # concrete_sample: softmax((log_alphas + gumbel) / lam) along features.
        log_num_s = (log_alphas + gumbel_ref[...]) * inv_lam
        m = jnp.max(log_num_s, axis=1, keepdims=True)
        log_den_s = m + jnp.log(jnp.sum(jnp.exp(log_num_s - m), axis=1, keepdims=True))
        log_samples = log_num_s - log_den_s  # exact log(sample), no exp/log round trip
        sample_ref[...] = jnp.exp(log_samples)
        # Log-prob of the drawn samples under the same alphas.
        lp_ref[...] = _log_prob_body(log_alphas, log_samples, lam, const_term, dim)

    return kernel


# -----------------------------------------------------------------------------
# Wrappers
# -----------------------------------------------------------------------------
def _const_term(dim, lam):
    # sum(log(arange(1, dim))) + (dim - 1) * log(lam)  (== 0 extra term for dim=1)
    return float(np.sum(np.log(np.arange(1, dim))) + (dim - 1) * np.log(lam))


def _choose_tile(B, requested_tb):
    """Batch tile: multiple of 8 sublanes, capped at the (padded) batch size."""
    b8 = ((B + 7) // 8) * 8
    tb = max(8, min(int(requested_tb), b8))
    tb = (tb // 8) * 8
    padded_B = ((B + tb - 1) // tb) * tb
    return padded_B, tb


def _pad_rows(x, padded_B, fill):
    B = x.shape[0]
    if padded_B == B:
        return x
    pad = jnp.full((padded_B - B,) + x.shape[1:], fill, x.dtype)
    return jnp.concatenate([x, pad], axis=0)


def _vmem_limit_bytes(tile_elems, param_elems):
    # double-buffered f32 streaming tiles + params, 2x safety margin,
    # clamped below v7x's 64 MiB physical VMEM.
    est = 4 * 2 * (tile_elems + param_elems)
    return int(min(max(2 * est, 16 * 2**20), 48 * 2**20))


def concrete_log_prob_pallas(u, cond_inputs, w, b, lam, *, tb=512):
    u = u.astype(jnp.float32)
    cond_inputs = cond_inputs.astype(jnp.float32)
    B, D = u.shape
    C = cond_inputs.shape[1]
    padded_B, tb = _choose_tile(B, tb)
    u_p = _pad_rows(u, padded_B, 1.0)          # log(1)=0 keeps padded rows finite
    cond_p = _pad_rows(cond_inputs, padded_B, 0.0)
    const_term = _const_term(D, lam)
    kernel = make_log_prob_kernel(float(lam), const_term, D)
    out = pl.pallas_call(
        kernel,
        out_shape=jax.ShapeDtypeStruct((padded_B, 1), jnp.float32),
        grid_spec=pltpu.PrefetchScalarGridSpec(
            num_scalar_prefetch=0,
            grid=(padded_B // tb,),
            in_specs=[
                pl.BlockSpec((tb, D), lambda i: (i, 0)),   # u
                pl.BlockSpec((tb, C), lambda i: (i, 0)),   # cond_inputs
                pl.BlockSpec((C, D), lambda i: (0, 0)),    # W (fetched once)
                pl.BlockSpec((1, D), lambda i: (0, 0)),    # b (fetched once)
            ],
            out_specs=pl.BlockSpec((tb, 1), lambda i: (i, 0)),
        ),
        compiler_params=pltpu.CompilerParams(
            dimension_semantics=("parallel",),
            vmem_limit_bytes=_vmem_limit_bytes(tb * (D + C + 1), C * D + D),
        ),
    )(u_p, cond_p, w.astype(jnp.float32), b.astype(jnp.float32))
    return out[:B]


def concrete_sample_pallas(cond_inputs, gumbels, w, b, lam, *, tb=512):
    cond_inputs = cond_inputs.astype(jnp.float32)
    gumbels = gumbels.astype(jnp.float32)
    B, C = cond_inputs.shape
    D = gumbels.shape[1]
    padded_B, tb = _choose_tile(B, tb)
    cond_p = _pad_rows(cond_inputs, padded_B, 0.0)
    gum_p = _pad_rows(gumbels, padded_B, 0.0)
    const_term = _const_term(D, lam)
    kernel = make_sample_kernel(float(lam), const_term, D)
    samples, log_probs = pl.pallas_call(
        kernel,
        out_shape=(
            jax.ShapeDtypeStruct((padded_B, D), jnp.float32),
            jax.ShapeDtypeStruct((padded_B, 1), jnp.float32),
        ),
        grid_spec=pltpu.PrefetchScalarGridSpec(
            num_scalar_prefetch=0,
            grid=(padded_B // tb,),
            in_specs=[
                pl.BlockSpec((tb, C), lambda i: (i, 0)),   # cond_inputs
                pl.BlockSpec((tb, D), lambda i: (i, 0)),   # gumbel noise
                pl.BlockSpec((C, D), lambda i: (0, 0)),    # W (fetched once)
                pl.BlockSpec((1, D), lambda i: (0, 0)),    # b (fetched once)
            ],
            out_specs=[
                pl.BlockSpec((tb, D), lambda i: (i, 0)),   # samples (lane-dense)
                pl.BlockSpec((tb, 1), lambda i: (i, 0)),   # log-probs
            ],
        ),
        compiler_params=pltpu.CompilerParams(
            dimension_semantics=("parallel",),
            vmem_limit_bytes=_vmem_limit_bytes(tb * (C + 2 * D + 1), C * D + D),
        ),
    )(cond_p, gum_p, w.astype(jnp.float32), b.astype(jnp.float32))
    return samples[:B], log_probs[:B]


class ConcreteConditionalDensityPallas:
    """JAX/Pallas port of the PyTorch ConcreteConditionalDensity.

    log_alpha_map is a deterministic Linear(C -> D): log_alphas = cond @ W + b.
    """

    def __init__(self, w, b, lam, *, tb=512):
        self.w = w
        self.b = b
        self.lam = lam
        self.tb = tb

    def __call__(self, mode, *args):
        if mode == "log-prob":
            return self._log_prob(*args)
        elif mode == "sample":
            return self._sample(*args)
        elif mode == "entropy":
            raise NotImplementedError
        else:
            raise AssertionError(f"Invalid mode {mode}")

    def log_prob(self, inputs, cond_inputs):
        return self("log-prob", inputs, cond_inputs)

    def sample(self, cond_inputs, gumbels):
        return self("sample", cond_inputs, gumbels)

    def _log_prob(self, inputs, cond_inputs):
        lp = concrete_log_prob_pallas(
            inputs, cond_inputs, self.w, self.b, self.lam, tb=self.tb
        )
        return {"log-prob": lp}

    def _sample(self, cond_inputs, gumbels):
        # Gumbel noise is generated outside (glue) for deterministic RNG;
        # the softmax/normalization/log-prob hot path runs in the kernel.
        samples, log_probs = concrete_sample_pallas(
            cond_inputs, gumbels, self.w, self.b, self.lam, tb=self.tb
        )
        return {"log-prob": log_probs, "sample": samples}


# -----------------------------------------------------------------------------
# Pure-JAX reference for correctness checking
# -----------------------------------------------------------------------------
def _ref_log_prob(u, alphas, lam):
    dim = u.shape[1]
    const_term = _const_term(dim, lam)
    log_den = jax.nn.logsumexp(jnp.log(alphas) - lam * jnp.log(u), axis=1, keepdims=True)
    log_num = jnp.log(alphas) - (lam + 1.0) * jnp.log(u)
    return const_term + jnp.sum(log_num - log_den, axis=1, keepdims=True)


if __name__ == "__main__":
    # B deliberately NOT a multiple of 8 to exercise the padding path.
    B, C, D = 10, 32, 128   # batch, cond features, event features
    lam = 2.0 / 3.0

    key = jax.random.PRNGKey(0)
    k_w, k_b, k_cond, k_u, k_g = jax.random.split(key, 5)

    # Deterministic Linear(C, D) parameters for log_alpha_map.
    w = (jax.random.normal(k_w, (C, D), jnp.float32) / np.sqrt(C)).astype(jnp.float32)
    b = (0.01 * jax.random.normal(k_b, (1, D), jnp.float32)).astype(jnp.float32)

    cond_inputs = jax.random.normal(k_cond, (B, C), jnp.float32)
    # u must live on the simplex (positive, sums to 1) for a valid Concrete log-prob.
    u = jax.nn.softmax(jax.random.normal(k_u, (B, D), jnp.float32), axis=1)
    gumbels = jax.random.gumbel(k_g, (B, D), jnp.float32)

    density = ConcreteConditionalDensityPallas(w, b, lam)

    # --- log-prob mode ---
    out_lp = density.log_prob(u, cond_inputs)
    lp = jax.block_until_ready(out_lp["log-prob"])

    # --- sample mode ---
    out_s = density.sample(cond_inputs, gumbels)
    samples = jax.block_until_ready(out_s["sample"])
    sample_lp = jax.block_until_ready(out_s["log-prob"])

    # Correctness checks against pure-JAX reference.
    alphas_ref = jnp.exp(cond_inputs @ w + b)
    lp_ref = _ref_log_prob(u, alphas_ref, lam)
    log_num_ref = (jnp.log(alphas_ref) + gumbels) / lam
    samples_ref = jnp.exp(log_num_ref - jax.nn.logsumexp(log_num_ref, axis=1, keepdims=True))
    sample_lp_ref = _ref_log_prob(samples_ref, alphas_ref, lam)

    assert lp.shape == (B, 1) and samples.shape == (B, D) and sample_lp.shape == (B, 1)
    np.testing.assert_allclose(np.asarray(lp), np.asarray(lp_ref), rtol=3e-4, atol=5e-3)
    np.testing.assert_allclose(np.asarray(samples), np.asarray(samples_ref), rtol=2e-4, atol=2e-5)
    np.testing.assert_allclose(np.asarray(sample_lp), np.asarray(sample_lp_ref), rtol=3e-4, atol=5e-3)
    np.testing.assert_allclose(np.asarray(samples).sum(axis=1), np.ones(B), rtol=1e-5)

    # TODO(synk): 'entropy' mode is NotImplementedError in the reference module; left unimplemented.
    print("KERNEL_OK")
</pallas_src>

<mosaic_0001>
module attributes {stable_mosaic.version = 11 : i64} {
  func.func @kernel(%arg0: i32, %arg1: memref<16x128xf32, #tpu.memory_space<vmem>>, %arg2: memref<16x32xf32, #tpu.memory_space<vmem>>, %arg3: memref<32x128xf32, #tpu.memory_space<vmem>>, %arg4: memref<1x128xf32, #tpu.memory_space<vmem>>, %arg5: memref<16x1xf32, #tpu.memory_space<vmem>>) attributes {dimension_semantics = [#tpu.dimension_semantics<parallel>], iteration_bounds = array<i64: 1>, scalar_prefetch = 0 : i64, scratch_operands = 0 : i64, tpu.core_type = #tpu.core_type<tc>, window_params = [{transform_indices = @transform_0, window_bounds = array<i64: 16, 128>}, {transform_indices = @transform_1, window_bounds = array<i64: 16, 32>}, {pipeline_mode = #tpu.pipeline_mode<synchronous>, transform_indices = @transform_2, window_bounds = array<i64: 32, 128>}, {pipeline_mode = #tpu.pipeline_mode<synchronous>, transform_indices = @transform_3, window_bounds = array<i64: 1, 128>}, {transform_indices = @transform_4, window_bounds = array<i64: 16, 1>}]} {
    %c0 = arith.constant 0 : index
    %c0_0 = arith.constant 0 : index
    %0 = vector.load %arg2[%c0, %c0_0] : memref<16x32xf32, #tpu.memory_space<vmem>>, vector<16x32xf32>
    %c0_1 = arith.constant 0 : index
    %c0_2 = arith.constant 0 : index
    %1 = vector.load %arg3[%c0_1, %c0_2] : memref<32x128xf32, #tpu.memory_space<vmem>>, vector<32x128xf32>
    %cst = arith.constant dense<0.000000e+00> : vector<16x128xf32>
    %2 = tpu.matmul %0, %1, %cst {dimension_numbers = #tpu.dot_dimension_numbers<[1], [0], [0], [1], [0, 0, 1, 1], [], []>} : vector<16x32xf32>, vector<32x128xf32>, vector<16x128xf32> -> vector<16x128xf32>
    %c0_3 = arith.constant 0 : index
    %c0_4 = arith.constant 0 : index
    %3 = vector.load %arg4[%c0_3, %c0_4] : memref<1x128xf32, #tpu.memory_space<vmem>>, vector<1x128xf32>
    %4 = vector.broadcast %3 : vector<1x128xf32> to vector<16x128xf32>
    %5 = arith.addf %2, %4 : vector<16x128xf32>
    %c0_5 = arith.constant 0 : index
    %c0_6 = arith.constant 0 : index
    %6 = vector.load %arg1[%c0_5, %c0_6] : memref<16x128xf32, #tpu.memory_space<vmem>>, vector<16x128xf32>
    %7 = math.log %6 : vector<16x128xf32>
    %cst_7 = arith.constant 0.666666686 : f32
    %8 = vector.broadcast %cst_7 : f32 to vector<16x128xf32>
    %9 = arith.mulf %8, %7 : vector<16x128xf32>
    %10 = arith.subf %5, %9 : vector<16x128xf32>
    %cst_8 = arith.constant dense<0xFF800000> : vector<16xf32>
    %11 = vector.multi_reduction <maximumf>, %10, %cst_8 [1] : vector<16x128xf32> to vector<16xf32>
    %12 = vector.shape_cast %11 : vector<16xf32> to vector<16x1xf32>
    %13 = vector.broadcast %12 : vector<16x1xf32> to vector<16x128xf32>
    %14 = arith.subf %10, %13 : vector<16x128xf32>
    %15 = math.exp %14 : vector<16x128xf32>
    %cst_9 = arith.constant dense<0.000000e+00> : vector<16xf32>
    %16 = vector.multi_reduction <add>, %15, %cst_9 [1] : vector<16x128xf32> to vector<16xf32>
    %17 = vector.shape_cast %16 : vector<16xf32> to vector<16x1xf32>
    %18 = math.log %17 : vector<16x1xf32>
    %19 = arith.addf %12, %18 : vector<16x1xf32>
    %20 = arith.subf %10, %7 : vector<16x128xf32>
    %cst_10 = arith.constant dense<0.000000e+00> : vector<16xf32>
    %21 = vector.multi_reduction <add>, %20, %cst_10 [1] : vector<16x128xf32> to vector<16xf32>
    %22 = vector.shape_cast %21 : vector<16xf32> to vector<16x1xf32>
    %cst_11 = arith.constant 440.059387 : f32
    %23 = vector.broadcast %cst_11 : f32 to vector<16x1xf32>
    %24 = arith.addf %23, %22 : vector<16x1xf32>
    %cst_12 = arith.constant 1.280000e+02 : f32
    %25 = vector.broadcast %cst_12 : f32 to vector<16x1xf32>
    %26 = arith.mulf %25, %19 : vector<16x1xf32>
    %27 = arith.subf %24, %26 : vector<16x1xf32>
    %c0_13 = arith.constant 0 : index
    %c0_14 = arith.constant 0 : index
    %28 = vector.load %arg5[%c0_13, %c0_14] : memref<16x1xf32, #tpu.memory_space<vmem>>, vector<16x1xf32>
    tpu.vector_store %arg5[%c0_13, %c0_14], %27 {strides = array<i32>} : memref<16x1xf32, #tpu.memory_space<vmem>>, vector<16x1xf32>,
    return
  }
  func.func @transform_0(%arg0: i32) -> (i32, i32) {
    %c0_i32 = arith.constant 0 : i32
    %c0_i32_0 = arith.constant 0 : i32
    return %arg0, %c0_i32 : i32, i32
  }
  func.func @transform_1(%arg0: i32) -> (i32, i32) {
    %c0_i32 = arith.constant 0 : i32
    %c0_i32_0 = arith.constant 0 : i32
    return %arg0, %c0_i32 : i32, i32
  }
  func.func @transform_2(%arg0: i32) -> (i32, i32) {
    %c0_i32 = arith.constant 0 : i32
    %c0_i32_0 = arith.constant 0 : i32
    %c0_i32_1 = arith.constant 0 : i32
    return %c0_i32, %c0_i32_0 : i32, i32
  }
  func.func @transform_3(%arg0: i32) -> (i32, i32) {
    %c0_i32 = arith.constant 0 : i32
    %c0_i32_0 = arith.constant 0 : i32
    %c0_i32_1 = arith.constant 0 : i32
    return %c0_i32, %c0_i32_0 : i32, i32
  }
  func.func @transform_4(%arg0: i32) -> (i32, i32) {
    %c0_i32 = arith.constant 0 : i32
    %c0_i32_0 = arith.constant 0 : i32
    return %arg0, %c0_i32 : i32, i32
  }
}

</mosaic_0001>

<bundles_post_ra>
// kernel: tpu_custom_call.1
= control target key start
LH: loop header
LB: loop body
LE: loop exit
PB: predicated region body
PF: predicated region fallthrough
CT: control target
= control target key end

     0   :  { %9 = vsyncpa [#allocation3], 0  ;;  %s410_s0 = inlined_call_operand.hbm [shape: f32[16,128], index: 0, kind: input, shape index: {}]   ;;  %s411_s1 = inlined_call_operand.hbm [shape: f32[16,32], index: 1, kind: input, shape index: {}]   ;;  %s412_s2 = inlined_call_operand.hbm [shape: f32[32,128], index: 2, kind: input, shape index: {}]   ;;  %s413_s3 = inlined_call_operand.vmem [shape: f32[1,128], index: 3, kind: input, shape index: {}]   ;;  %s414_s4 = inlined_call_operand.vmem [shape: f32[16,1], index: 4, kind: output, shape index: {}]  }
   0x1   :  { %10 = vsyncpa [#allocation5], 0  ;;  %s319_s15 = smov [#allocation4]   ;;  %s320_s17 = smov [#allocation2]  }
   0x2   :  { %s28_s16 = sshll.u32 %s319_s15, 4  ;;  %s16_s18 = sshll.u32 %s320_s17, 4  ;;  %s29_s16 = int_to_ptr.vmem [resolvable:$true] %s28_s16  ;;  %s349_s18 = int_to_ptr.vmem [resolvable:$true] %s16_s18 }
   0x3   :  { %s249_s21 = scalar_lea.hbm %s411_s1, 256 }
   0x4   :  { %p250_p0 = scmp.ne.s32.totalorder %s411_s1, %s249_s21  ;;  %p253_p1 = scmp.lt.u32.totalorder %s249_s21, %s411_s1 }
   0x6   :  { %p255_p2 = pnand %p253_p1, %p250_p0 }
   0x8   :  { %258 = shalt.err (!%p255_p2)
}
   0x9   :  { %s259_s26 = scalar_lea.vmem %s29_s16, 256  ;;  %p264_p4 = scmp.lt.s32.totalorder %s29_s16, %s29_s16 }
   0xa   :  { %p260_p3 = scmp.ne.s32.totalorder %s29_s16, %s259_s26  ;;  %p265_p5 = scmp.lt.s32.totalorder %s259_s26, %s259_s26 }
   0xc   :  { %p266_p6 = por %p265_p5, %p264_p4 }
   0xe   :  { %p267_p7 = pnand %p266_p6, %p260_p3 }
  0x10   :  { %270 = shalt.err (!%p267_p7)
}
  0x11   :  { %s321_s27 = smov 128   ;;  %s322_s28 = smov 8  }
  0x12   :  { %34 = dma.hbm_to_vmem [thread:$0]  %s411_s1, 256, %s29_s16, [#allocation5], %s321_s27, %s321_s27, %s322_s28  }
  0x13   :  { %s271_s7 = scalar_lea.hbm %s410_s0, 256 }
  0x14   :  { %p272_p8 = scmp.ne.s32.totalorder %s410_s0, %s271_s7  ;;  %p275_p9 = scmp.lt.u32.totalorder %s271_s7, %s410_s0 }
  0x16   :  { %p277_p10 = pnand %p275_p9, %p272_p8 }
  0x18   :  { %280 = shalt.err (!%p277_p10)
}
  0x19   :  { %s281_s12 = scalar_lea.vmem %s349_s18, 256  ;;  %p286_p12 = scmp.lt.s32.totalorder %s349_s18, %s349_s18 }
  0x1a   :  { %p282_p11 = scmp.ne.s32.totalorder %s349_s18, %s281_s12  ;;  %p287_p13 = scmp.lt.s32.totalorder %s281_s12, %s281_s12 }
  0x1c   :  { %p288_p0 = por %p287_p13, %p286_p12 }
  0x1e   :  { %p289_p1 = pnand %p288_p0, %p282_p11 }
  0x20   :  { %292 = shalt.err (!%p289_p1)
}
  0x21   :  { %22 = dma.hbm_to_vmem [thread:$0]  %s410_s0, 256, %s349_s18, [#allocation3], %s321_s27, %s321_s27, %s322_s28  }
  0x22   :  { %s323_s14 = smov [#allocation6]   ;;  %s293_s19 = scalar_lea.hbm %s412_s2, 512 }
  0x23   :  { %s40_s15 = sshll.u32 %s323_s14, 4  ;;  %p294_p2 = scmp.ne.s32.totalorder %s412_s2, %s293_s19  ;;  %s41_s15 = int_to_ptr.vmem [resolvable:$true] %s40_s15 }
  0x24   :  { %p297_p3 = scmp.lt.u32.totalorder %s293_s19, %s412_s2 }
  0x26   :  { %p299_p4 = pnand %p297_p3, %p294_p2 }
  0x28   :  { %302 = shalt.err (!%p299_p4)
}
  0x29   :  { %s303_s24 = scalar_lea.vmem %s41_s15, 512  ;;  %p308_p6 = scmp.lt.s32.totalorder %s41_s15, %s41_s15 }
  0x2a   :  { %p304_p5 = scmp.ne.s32.totalorder %s41_s15, %s303_s24  ;;  %p309_p7 = scmp.lt.s32.totalorder %s303_s24, %s303_s24 }
  0x2c   :  { %p310_p8 = por %p309_p7, %p308_p6 }
  0x2e   :  { %p311_p9 = pnand %p310_p8, %p304_p5 }
  0x30   :  { %314 = shalt.err (!%p311_p9)
}
  0x31   :  { %46 = dma.hbm_to_vmem [thread:$0]  %s412_s2, 512, %s41_s15, [#allocation5], %s321_s27, %s321_s27, %s322_s28  }
  0x32   :  { %315 = dma.done.wait [#allocation3], 256  }
  0x33   :  { %316 = vsyncadd [#allocation3], 4294967040 }
  0x34   :  { %317 = dma.done.wait [#allocation5], 768  }
  0x35   :  { %318 = vsyncadd [#allocation5], 4294966528  ;;  %vm71_vm0 = vcmask 261120   ;;  %v60_v0 = vld [vmem:[#allocation6] sm:$0xff]  ;;  %v61_v1 = vld [vmem:[#allocation6 + $0x8] sm:$0xff]  ;;  %vm195_vm1 = vcmask 7168  }
  0x36   :  { %v62_v2 = vld [vmem:[#allocation6 + $0x10] sm:$0xff]  ;;  %v224_v3 = vpack.c.bf16 %v61_v1, %v60_v0  ;;  %v63_v4 = vld [vmem:[#allocation6 + $0x18] sm:$0xff]  ;;  %v153_v8 = vld [vmem:[#allocation2] sm:$0xff] }
  0x37   :  { %v58_v5 = vld [vmem:[#allocation4] sm:$0xff]  ;;  %v228_v6 = vpack.c.bf16 %v63_v4, %v62_v2  ;;  %v59_v7 = vld [vmem:[#allocation4 + $0x8] sm:$0xff]  ;;  %237 = vlog2.f32 %v153_v8  ;;  %v154_v9 = vld [vmem:[#allocation2 + $0x8] sm:$0xff] }
  0x38   :  { %221 = vmatprep.mubr.msk.f32.mxu0 %vm71_vm0, %v58_v5  ;;  %225 = vmatprep.subr.bf16.mxu0 %v224_v3  ;;  %239 = vlog2.f32 %v154_v9  ;;  %v204_v13 = vld [vmem:[%s413_s3] ss:$0 sm:$0xff] }
  0x39   :  { %227 = vmatpush3.bf16.msra.mxu0 %v224_v3 }
  0x3a   :  { %229 = vmatprep.subr.bf16.mxu0 %v228_v6 }
  0x3d   :  { %231 = vmatpush3.bf16.msra.mxu0 %v228_v6 }
  0x40   :  { %222 = vmatmul.mubr.msk.f32.vlgmr.msra.gmra.mrb[0].mxu0 %vm71_vm0, %v59_v7 }
  0x41   :  { %v238_v10 = vpop.eup %237 }
  0x42   :  { %v156_v11 = vmul.f32 0.6931472, %v238_v10  ;;  %v240_v12 = vpop.eup %239 }
  0x43   :  { %v158_v15 = vmul.f32 0.6931472, %v240_v12 }
  0x44   :  { %v159_v16 = vmul.f32 0.6666667, %v156_v11 }
  0x45   :  { %v160_v20 = vmul.f32 0.6666667, %v158_v15 }
 0x113   :  { %v223_v14 = vpop.f32.mrb[0].mxu0 }
 0x114   :  { %v144_v17 = vpop.f32.mrb[1].mxu0  ;;  %v150_v19 = vadd.f32 %v223_v14, %v204_v13 }
 0x115   :  { %v145_v18 = vadd.f32 %v204_v13, %v144_v17 }
 0x116   :  { %v162_v22 = vsub.f32 %v150_v19, %v160_v20 }
 0x117   :  { %v161_v21 = vsub.f32 %v145_v18, %v159_v16 }
 0x118   :  { %v184_v32 = vsub.f32 %v162_v22, %v158_v15 }
 0x119   :  { %163 = vmax.xlane.f32.xlu0 %v161_v21  ;;  %v183_v23 = vsub.f32 %v161_v21, %v156_v11 }
 0x11d   :  { %165 = vmax.xlane.f32.xlu0 %v162_v22 }
 0x121   :  { %185 = vadd.xlane.f32.xlu0 %v183_v23 }
 0x1a6   :  { %v164_v24 = vpop.xlane.xlu0 %163 }
 0x1a7   :  { %v167_v25 = vsub.f32 %v161_v21, %v164_v24 }
 0x1a9   :  { %v169_v26 = vmul.f32 1.442695, %v167_v25 }
 0x1aa   :  { %v166_v27 = vpop.xlane.xlu0 %165 }
 0x1ab   :  { %v168_v28 = vsub.f32 %v162_v22, %v166_v27  ;;  %241 = vpow2.f32 %v169_v26 }
 0x1ad   :  { %v171_v29 = vmul.f32 1.442695, %v168_v28 }
 0x1ae   :  { %v186_v37 = vpop.xlane.xlu0 %185 }
 0x1af   :  { %243 = vpow2.f32 %v171_v29  ;;  %v189_v40 = vadd.f32 440.0594, %v186_v37 }
 0x1b5   :  { %v242_v30 = vpop.eup %241 }
 0x1b6   :  { %173 = vadd.xlane.f32.xlu1 %v242_v30 }
 0x1b9   :  { %v244_v31 = vpop.eup %243 }
 0x1ba   :  { %175 = vadd.xlane.f32.xlu1 %v244_v31 }
 0x1be   :  { %187 = vadd.xlane.f32.xlu1 %v184_v32 }
 0x243   :  { %v174_v33 = vpop.xlane.xlu1 %173 }
 0x244   :  { %245 = vlog2.f32 %v174_v33 }
 0x247   :  { %v176_v34 = vpop.xlane.xlu1 %175 }
 0x248   :  { %247 = vlog2.f32 %v176_v34 }
 0x24b   :  { %v188_v43 = vpop.xlane.xlu1 %187 }
 0x24c   :  { %v190_v47 = vadd.f32 440.0594, %v188_v43 }
 0x24e   :  { %v246_v35 = vpop.eup %245 }
 0x24f   :  { %v178_v36 = vmul.f32 0.6931472, %v246_v35 }
 0x251   :  { %v181_v38 = vadd.f32 %v178_v36, %v164_v24 }
 0x252   :  { %v248_v39 = vpop.eup %247 }
 0x253   :  { %v191_v41 = vmul.f32 128.0, %v181_v38  ;;  %v180_v42 = vmul.f32 0.6931472, %v248_v39 }
 0x255   :  { %v193_v44 = vsub.f32 %v189_v40, %v191_v41  ;;  %v182_v45 = vadd.f32 %v180_v42, %v166_v27 }
 0x257   :  { %v192_v46 = vmul.f32 128.0, %v182_v45  ;;  %196 = vst.msk [vmem:[%s414_s4] sm:$0xff] %vm195_vm1, %v193_v44 }
 0x259   :  { %v194_v48 = vsub.f32 %v190_v47, %v192_v46 }
 0x25b   :  { %197 = vst.msk [vmem:[%s414_s4 + $0x8] sm:$0xff] %vm195_vm1, %v194_v48 }
 0x25c   :  { %202 = vsyncpa [#allocation3], 1 }
 0x25d   :  { %203 = vsyncpa [#allocation5], 1 }

</bundles_post_ra>
